<compile_context>
chip_gen: v5e
topology: v5e:2x2
jax: 0.10.0
libtpu: 0.0.40
codegen_flags: <defaults>
</compile_context>

<pallas_src>
import jax
import jax.numpy as jnp
import numpy as np
from jax.experimental import pallas as pl
from jax.experimental.pallas import tpu as pltpu


def _round_up(v, m):
    return (v + m - 1) // m * m


def _vmem_capacity_bytes():
    try:
        info = pltpu.get_tpu_info()
        cap = getattr(info, "vmem_capacity_bytes", None)
        if cap:
            return int(cap)
    except Exception:
        pass
    return 64 * 1024 * 1024  # conservative (v7x per-TensorCore)


def _pick_tb(B, num_patches, per_img_bytes, fixed_bytes, budget, prefer_many_steps):
    """Largest batch tile whose double-buffered blocks + scratch fit `budget`.

    Constraints: TB divides B; the output block row count (TB*num_patches) is
    sublane-aligned (multiple of 8) or covers the full row dim (TB == B).
    On small-VMEM parts prefer keeping >= 4 grid steps along the parallel
    batch axis so both v7x TensorCores stay fed with a real pipeline.
    """
    cands = sorted({c for c in (32, 16, 8, 4, 2, 1, B) if 0 < c <= B and B % c == 0},
                   reverse=True)
    valid = []
    for tb in cands:
        if (tb * num_patches) % 8 != 0 and tb != B:
            continue
        if fixed_bytes + tb * per_img_bytes > budget:
            continue
        valid.append(tb)
    if not valid:
        return None
    if prefer_many_steps:
        fed = [tb for tb in valid if B // tb >= 4]
        if fed:
            return max(fed)
    return max(valid)


# ---------------------------------------------------------------------------
# Fused kernel: in-kernel im2col (lane-dense per-channel slabs) + MXU matmul.
# ---------------------------------------------------------------------------
def _build_fused(B, C, H, W, P, nH, nW, Kp, Dp, TD, TB, out_dtype, vmem_limit):
    num_patches = nH * nW
    K = C * P * P
    nD = Dp // TD

    def kernel(x_ref, w_ref, b_ref, o_ref, p_scr):
        # Patchify only on the first embed-dim tile; the scratch persists and
        # is reused for the remaining j tiles (the D axis is the inner,
        # "arbitrary" grid axis -- do not reorder the grid / semantics).
        @pl.when(pl.program_id(1) == 0)
        def _patchify():
            if Kp > K:  # zero the K-padding lanes (padded weight rows are zero,
                        # but uninitialized VMEM could hold NaN bit patterns)
                p_scr[:, K:] = jnp.zeros((TB * num_patches, Kp - K), p_scr.dtype)
            # C is tiny (1..4): short static loop; all TB images are relayouted
            # together so there is exactly one wide store per channel.
            for c in range(C):
                xc = x_ref[:, c]                            # (TB, H, W) bf16
                xc = xc.reshape(TB * nH, P, W)              # rows=(t,i) sub=ph lane=(j,pw)
                xc = jnp.swapaxes(xc, 1, 2)                 # (TB*nH, W, P): one XLU transpose
                xc = xc.reshape(TB * nH * nW, P, P)         # rows=(t,i,j)
                slab = xc.reshape(TB * num_patches, P * P)  # lane=(pw,ph): lane-dense slab
                p_scr[:, c * P * P:(c + 1) * P * P] = slab  # single wide store per channel

        # bf16 MXU matmul, f32 accumulation, f32 bias, one 2-D lane-dense store.
        acc = jnp.dot(p_scr[...], w_ref[...], preferred_element_type=jnp.float32)
        o_ref[...] = (acc + b_ref[...]).astype(o_ref.dtype)

    return pl.pallas_call(
        kernel,
        out_shape=jax.ShapeDtypeStruct((B * num_patches, Dp), out_dtype),
        grid=(B // TB, nD),
        in_specs=[
            pl.BlockSpec((TB, C, H, W), lambda b, j: (b, 0, 0, 0)),
            pl.BlockSpec((Kp, TD), lambda b, j: (0, j)),
            pl.BlockSpec((1, TD), lambda b, j: (0, j)),
        ],
        out_specs=pl.BlockSpec((TB * num_patches, TD), lambda b, j: (b, j)),
        scratch_shapes=[pltpu.VMEM((TB * num_patches, Kp), jnp.bfloat16)],
        compiler_params=pltpu.CompilerParams(
            dimension_semantics=("parallel", "arbitrary"),
            vmem_limit_bytes=vmem_limit,
        ),
    )


_FUSED_CACHE = {}


def _fused_or_none(key, builder, arg_shapes):
    """Build + AOT-compile the fused pallas_call once per shape signature.

    Only lowering/compilation errors select the fallback; runtime errors are
    never swallowed. Works both eagerly and when patch_embed is traced under
    an outer jit (the probe uses abstract shapes only).
    """
    if key not in _FUSED_CACHE:
        fn = jax.jit(builder())
        try:
            fn.lower(*arg_shapes).compile()
            _FUSED_CACHE[key] = fn
        except Exception:  # Mosaic cannot lower the in-kernel relayout here
            _FUSED_CACHE[key] = None
    return _FUSED_CACHE[key]


# ---------------------------------------------------------------------------
# Fallback: wrapper-side im2col (XLA) + tiled/pipelined bf16 matmul kernel.
# ---------------------------------------------------------------------------
def _matmul_kernel(p_ref, w_ref, b_ref, o_ref):
    acc = jnp.dot(p_ref[...], w_ref[...], preferred_element_type=jnp.float32)
    o_ref[...] = (acc + b_ref[...]).astype(o_ref.dtype)


def _patch_embed_unfused(x, w2, b2, P, nH, nW, Kp, Dp, TD, out_dtype, vmem_limit):
    B, C, H, W = x.shape
    num_patches = nH * nW
    K = C * P * P
    M = B * num_patches
    nD = Dp // TD

    # im2col in XLA (one extra HBM round trip); x is already bf16.
    patches = (x.reshape(B, C, nH, P, nW, P)
               .transpose(0, 2, 4, 1, 5, 3)           # (b, i, j, c, pw, ph)
               .reshape(M, K))
    if Kp != K:
        patches = jnp.pad(patches, ((0, 0), (0, Kp - K)))

    TM = min(512, _round_up(M, 8))
    Mp = _round_up(M, TM)
    if Mp != M:
        patches = jnp.pad(patches, ((0, Mp - M), (0, 0)))

    out = pl.pallas_call(
        _matmul_kernel,
        out_shape=jax.ShapeDtypeStruct((Mp, Dp), out_dtype),
        grid=(Mp // TM, nD),
        in_specs=[
            pl.BlockSpec((TM, Kp), lambda i, j: (i, 0)),
            pl.BlockSpec((Kp, TD), lambda i, j: (0, j)),
            pl.BlockSpec((1, TD), lambda i, j: (0, j)),
        ],
        out_specs=pl.BlockSpec((TM, TD), lambda i, j: (i, j)),
        compiler_params=pltpu.CompilerParams(
            dimension_semantics=("parallel", "parallel"),
            vmem_limit_bytes=vmem_limit,
        ),
    )(patches, w2, b2)
    return out[:M]


# ---------------------------------------------------------------------------
# Public wrapper with PyTorch-equivalent semantics.
# ---------------------------------------------------------------------------
def patch_embed(x, weight, bias, patch_size, out_dtype=jnp.bfloat16):
    """ViT patch embedding (PyTorch PatchEmbed.forward equivalent).

    x: (B, C, H, W) NCHW; weight: (D, C, P, P); bias: (D,).
    Returns (B, num_patches, D) in `out_dtype` (bf16 by default: the MXU
    operands are bf16 anyway and downstream ViT blocks typically run bf16).
    """
    P = patch_size
    B, C, H, W = x.shape
    D = weight.shape[0]

    # Exact PyTorch padding semantics (incl. the quirk: if only one of H/W is
    # non-divisible, no padding is applied and the strided VALID conv silently
    # drops the remainder).
    if H % P != 0 or W % P != 0:
        pad_h = P - H % P
        pad_w = P - W % P
        if pad_h < P and pad_w < P:
            x = jnp.pad(x, ((0, 0), (0, 0), (0, pad_h), (0, pad_w)))
            H, W = H + pad_h, W + pad_w
    nH, nW = H // P, W // P
    if nH * P != H or nW * P != W:
        x = x[:, :, :nH * P, :nW * P]
        H, W = nH * P, nW * P
    num_patches = nH * nW

    K = C * P * P
    Kp = _round_up(K, 128)     # lane-dense K for MXU operands / slab stores
    Dp = _round_up(D, 128)     # lane-dense embed dim (unmasked vst)

    # Generation-aware VMEM budgets.
    vmem_cap = _vmem_capacity_bytes()
    if vmem_cap >= 128 * 1024 * 1024:           # v5e / v6e: 128 MiB per core
        block_budget, vmem_limit, prefer_many_steps = 64 << 20, 96 << 20, False
    else:                                        # v7x (64 MiB/TC) or unknown
        block_budget, vmem_limit, prefer_many_steps = 24 << 20, 48 << 20, True

    # Single embed-dim tile (weight DMA'd once for the whole grid) whenever the
    # double-buffered bf16 weight fits a fraction of the budget.
    if 2 * Kp * Dp * 2 <= block_budget // 4:
        TD = Dp
    else:
        TD = 512
        Dp = _round_up(Dp, TD)

    # Conv weight (D, C, Ph, Pw) -> (Kp, Dp) with K order (c, pw, ph) matching
    # the in-kernel flatten order; bf16 MXU operands, f32 bias.
    w2 = jnp.transpose(weight, (1, 3, 2, 0)).reshape(K, D)
    b2 = bias
    if Dp != D:
        w2 = jnp.pad(w2, ((0, 0), (0, Dp - D)))
        b2 = jnp.pad(b2, (0, Dp - D))
    if Kp != K:
        w2 = jnp.pad(w2, ((0, Kp - K), (0, 0)))
    w2 = w2.astype(jnp.bfloat16)
    b2 = b2.reshape(1, Dp).astype(jnp.float32)

    # bf16 raw-image DMA: halves input HBM traffic, zero extra precision loss.
    x = x.astype(jnp.bfloat16)

    out_itemsize = np.dtype(out_dtype).itemsize

    # Batch tile for the fused path: double-buffered in/out blocks + patches
    # scratch + f32 matmul intermediate must fit the budget.
    per_img = (2 * C * H * W * 2                       # input block (bf16, x2 buf)
               + 2 * num_patches * Dp * out_itemsize   # output block (x2 buf)
               + num_patches * Kp * 2                  # patches scratch (bf16)
               + num_patches * TD * 4)                 # f32 dot intermediate
    fixed = 2 * Kp * TD * 2 + 2 * TD * 4               # weight + bias blocks
    TB = _pick_tb(B, num_patches, per_img, fixed, block_budget, prefer_many_steps)
    # TODO(synk): tile num_patches inside the fused kernel for images whose
    # single-image block exceeds the budget (such shapes use the unfused path).

    fused = None
    if TB is not None:
        key = (B, C, H, W, P, Kp, Dp, TD, TB, np.dtype(out_dtype).name, vmem_limit)
        arg_shapes = (jax.ShapeDtypeStruct((B, C, H, W), jnp.bfloat16),
                      jax.ShapeDtypeStruct((Kp, Dp), jnp.bfloat16),
                      jax.ShapeDtypeStruct((1, Dp), jnp.float32))
        fused = _fused_or_none(
            key,
            lambda: _build_fused(B, C, H, W, P, nH, nW, Kp, Dp, TD, TB,
                                 out_dtype, vmem_limit),
            arg_shapes)

    if fused is not None:
        out = fused(x, w2, b2)                          # (B*num_patches, Dp)
    else:
        out = _patch_embed_unfused(x, w2, b2, P, nH, nW, Kp, Dp, TD,
                                   out_dtype, vmem_limit)

    out = out.reshape(B, num_patches, Dp)
    if Dp != D:
        out = out[..., :D]
    return out


if __name__ == "__main__":
    # Small shapes consistent with the module: img 16x16, patch 8, C=4, D=32.
    B, C, H, W = 2, 4, 16, 16
    P = 8
    embed_dim = 32

    key = jax.random.PRNGKey(0)
    kx, kw, kb = jax.random.split(key, 3)
    x = jax.random.normal(kx, (B, C, H, W), dtype=jnp.float32)
    weight = jax.random.normal(kw, (embed_dim, C, P, P), dtype=jnp.float32) * 0.02
    bias = jax.random.normal(kb, (embed_dim,), dtype=jnp.float32) * 0.02

    out = patch_embed(x, weight, bias, P)               # bf16 output (default)
    out = jax.block_until_ready(out)

    # Reference: NCHW conv with stride == kernel == patch (PyTorch semantics).
    ref = jax.lax.conv_general_dilated(
        x, weight, window_strides=(P, P), padding="VALID",
        dimension_numbers=("NCHW", "OIHW", "NCHW"),
    ) + bias.reshape(1, embed_dim, 1, 1)
    ref = ref.reshape(B, embed_dim, -1).transpose(0, 2, 1)

    assert out.shape == (B, (H // P) * (W // P), embed_dim), out.shape
    assert out.dtype == jnp.bfloat16, out.dtype
    # bf16 MXU operands + bf16 output -> bf16-level tolerance vs the f32 conv.
    err = float(jnp.max(jnp.abs(out.astype(jnp.float32) - ref)))
    assert err < 3e-2, f"mismatch vs conv reference, max abs err {err}"
    print("KERNEL_OK")
</pallas_src>

<mosaic_0001>
module attributes {stable_mosaic.version = 11 : i64} {
  func.func @_matmul_kernel(%arg0: i32, %arg1: i32, %arg2: memref<8x256xbf16, #tpu.memory_space<vmem>>, %arg3: memref<256x128xbf16, #tpu.memory_space<vmem>>, %arg4: memref<1x128xf32, #tpu.memory_space<vmem>>, %arg5: memref<8x128xbf16, #tpu.memory_space<vmem>>) attributes {dimension_semantics = [#tpu.dimension_semantics<parallel>, #tpu.dimension_semantics<parallel>], iteration_bounds = array<i64: 1, 1>, scalar_prefetch = 0 : i64, scratch_operands = 0 : i64, tpu.core_type = #tpu.core_type<tc>, window_params = [{transform_indices = @transform_0, window_bounds = array<i64: 8, 256>}, {transform_indices = @transform_1, window_bounds = array<i64: 256, 128>}, {transform_indices = @transform_2, window_bounds = array<i64: 1, 128>}, {transform_indices = @transform_3, window_bounds = array<i64: 8, 128>}]} {
    %c0 = arith.constant 0 : index
    %c0_0 = arith.constant 0 : index
    %0 = vector.load %arg2[%c0, %c0_0] : memref<8x256xbf16, #tpu.memory_space<vmem>>, vector<8x256xbf16>
    %c0_1 = arith.constant 0 : index
    %c0_2 = arith.constant 0 : index
    %1 = vector.load %arg3[%c0_1, %c0_2] : memref<256x128xbf16, #tpu.memory_space<vmem>>, vector<256x128xbf16>
    %cst = arith.constant dense<0.000000e+00> : vector<8x128xf32>
    %2 = tpu.matmul %0, %1, %cst {dimension_numbers = #tpu.dot_dimension_numbers<[1], [0], [0], [1], [0, 0, 1, 1], [], []>} : vector<8x256xbf16>, vector<256x128xbf16>, vector<8x128xf32> -> vector<8x128xf32>
    %c0_3 = arith.constant 0 : index
    %c0_4 = arith.constant 0 : index
    %3 = vector.load %arg4[%c0_3, %c0_4] : memref<1x128xf32, #tpu.memory_space<vmem>>, vector<1x128xf32>
    %4 = vector.broadcast %3 : vector<1x128xf32> to vector<8x128xf32>
    %5 = arith.addf %2, %4 : vector<8x128xf32>
    %6 = arith.truncf %5 : vector<8x128xf32> to vector<8x128xbf16>
    %c0_5 = arith.constant 0 : index
    %c0_6 = arith.constant 0 : index
    %7 = vector.load %arg5[%c0_5, %c0_6] : memref<8x128xbf16, #tpu.memory_space<vmem>>, vector<8x128xbf16>
    tpu.vector_store %arg5[%c0_5, %c0_6], %6 {strides = array<i32>} : memref<8x128xbf16, #tpu.memory_space<vmem>>, vector<8x128xbf16>,
    return
  }
  func.func @transform_0(%arg0: i32, %arg1: i32) -> (i32, i32) {
    %c0_i32 = arith.constant 0 : i32
    %c0_i32_0 = arith.constant 0 : i32
    return %arg0, %c0_i32 : i32, i32
  }
  func.func @transform_1(%arg0: i32, %arg1: i32) -> (i32, i32) {
    %c0_i32 = arith.constant 0 : i32
    %c0_i32_0 = arith.constant 0 : i32
    return %c0_i32, %arg1 : i32, i32
  }
  func.func @transform_2(%arg0: i32, %arg1: i32) -> (i32, i32) {
    %c0_i32 = arith.constant 0 : i32
    %c0_i32_0 = arith.constant 0 : i32
    return %c0_i32, %arg1 : i32, i32
  }
  func.func @transform_3(%arg0: i32, %arg1: i32) -> (i32, i32) {
    %c0_i32 = arith.constant 0 : i32
    return %arg0, %arg1 : i32, i32
  }
}

</mosaic_0001>

<bundles_post_ra>
// kernel: tpu_custom_call.1
= control target key start
LH: loop header
LB: loop body
LE: loop exit
PB: predicated region body
PF: predicated region fallthrough
CT: control target
= control target key end

     0   :  { %8 = vsyncpa [#allocation3], 0  ;;  %s432_s0 = inlined_call_operand.hbm [shape: bf16[8,256], index: 0, kind: input, shape index: {}]   ;;  %s433_s1 = inlined_call_operand.hbm [shape: bf16[256,128], index: 1, kind: input, shape index: {}]   ;;  %s434_s2 = inlined_call_operand.vmem [shape: f32[1,128], index: 2, kind: input, shape index: {}]   ;;  %s435_s3 = inlined_call_operand.hbm [shape: bf16[8,128], index: 3, kind: output, shape index: {}]  }
   0x1   :  { %9 = vsyncpa [#allocation6], 0 }
   0x2   :  { %10 = vsyncpa [#allocation4], 0  ;;  %s16_s14 = sshll.u32 %s432_s0, 4  ;;  %s395_s15 = smov [#allocation2]   ;;  %s17_s14 = int_to_ptr.hbm [resolvable:$true] %s16_s14 }
   0x3   :  { %s18_s16 = sshll.u32 %s395_s15, 4  ;;  %s26_s19 = sshll.u32 %s433_s1, 4  ;;  %s19_s16 = int_to_ptr.vmem [resolvable:$true] %s18_s16  ;;  %s27_s19 = int_to_ptr.hbm [resolvable:$true] %s26_s19 }
   0x4   :  { %21 = dma.hbm_to_vmem [thread:$0]  %s17_s14, 128, %s19_s16, [#allocation3]  }
   0x5   :  { %s396_s20 = smov [#allocation5]   ;;  %s397_s22 = smov 64  }
   0x6   :  { %s28_s21 = sshll.u32 %s396_s20, 4  ;;  %s398_s23 = smov 4   ;;  %s29_s21 = int_to_ptr.vmem [resolvable:$true] %s28_s21 }
   0x7   :  { %34 = dma.hbm_to_vmem [thread:$0]  %s27_s19, 2048, %s29_s21, [#allocation6], %s397_s22, %s397_s22, %s398_s23  }
   0x8   :  { %389 = dma.done.wait [#allocation3], 128  }
   0x9   :  { %390 = vsyncadd [#allocation3], 4294967168 }
   0xa   :  { %391 = dma.done.wait [#allocation6], 2048  }
   0xb   :  { %392 = vsyncadd [#allocation6], 4294965248  ;;  %v302_v0 = vld [vmem:[#allocation5 + $0x38] sm:$0xff]  ;;  %v301_v2 = vld [vmem:[#allocation5 + $0x30] sm:$0xff]  ;;  %s399_s24 = smov [#allocation7]   ;;  %s220_s28 = sshll.u32 %s435_s3, 4  ;;  %s221_s28 = int_to_ptr.hbm [resolvable:$true] %s220_s28 }
   0xc   :  { %v310_v1 = vld [vmem:[#allocation5 + $0x78] sm:$0xff]  ;;  %185 = vmatpush.bf16.msra.mxu0 %v302_v0  ;;  %v309_v3 = vld [vmem:[#allocation5 + $0x70] sm:$0xff]  ;;  %v300_v4 = vld [vmem:[#allocation5 + $0x28] sm:$0xff]  ;;  %s218_s25 = sshll.u32 %s399_s24, 4  ;;  %s219_s25 = int_to_ptr.vmem [resolvable:$true] %s218_s25 }
   0xd   :  { %198 = vmatpush.bf16.msra.mxu1 %v310_v1  ;;  %v308_v5 = vld [vmem:[#allocation5 + $0x68] sm:$0xff]  ;;  %v299_v6 = vld [vmem:[#allocation5 + $0x20] sm:$0xff]  ;;  %v298_v8 = vld [vmem:[#allocation5 + $0x18] sm:$0xff] }
   0xe   :  { %v307_v7 = vld [vmem:[#allocation5 + $0x60] sm:$0xff]  ;;  %v306_v9 = vld [vmem:[#allocation5 + $0x58] sm:$0xff]  ;;  %v297_v10 = vld [vmem:[#allocation5 + $0x10] sm:$0xff] }
   0xf   :  { %v305_v11 = vld [vmem:[#allocation5 + $0x50] sm:$0xff]  ;;  %v296_v12 = vld [vmem:[#allocation5 + $0x8] sm:$0xff]  ;;  %v45_v14 = vld [vmem:[#allocation2] sm:$0xff] }
  0x10   :  { %186 = vmatpush.bf16.msra.mxu0 %v301_v2  ;;  %v304_v13 = vld [vmem:[#allocation5 + $0x48] sm:$0xff]  ;;  %v83_v15 = vunpack.c.l.b16 %v45_v14  ;;  %v84_v16 = vunpack.c.h.b16 %v45_v14  ;;  %v295_v17 = vld [vmem:[#allocation5] sm:$0xff]  ;;  %v316_v21 = vld [vmem:[%s434_s2] ss:$0 sm:$0xff] }
  0x11   :  { %199 = vmatpush.bf16.msra.mxu1 %v309_v3  ;;  %v303_v18 = vld [vmem:[#allocation5 + $0x40] sm:$0xff] }
  0x12   :  { %v85_v19 = vpack.c.b16 %v83_v15, %v83_v15  ;;  %v86_v20 = vpack.c.b16 %v84_v16, %v84_v16 }
  0x14   :  { %187 = vmatpush.bf16.msra.mxu0 %v300_v4 }
  0x15   :  { %200 = vmatpush.bf16.msra.mxu1 %v308_v5 }
  0x18   :  { %188 = vmatpush.bf16.msra.mxu0 %v299_v6 }
  0x19   :  { %201 = vmatpush.bf16.msra.mxu1 %v307_v7 }
  0x1c   :  { %189 = vmatpush.bf16.msra.mxu0 %v298_v8 }
  0x1d   :  { %202 = vmatpush.bf16.msra.mxu1 %v306_v9 }
  0x20   :  { %190 = vmatpush.bf16.msra.mxu0 %v297_v10 }
  0x21   :  { %203 = vmatpush.bf16.msra.mxu1 %v305_v11 }
  0x24   :  { %191 = vmatpush.bf16.msra.mxu0 %v296_v12 }
  0x25   :  { %204 = vmatpush.bf16.msra.mxu1 %v304_v13 }
  0x28   :  { %192 = vmatpush.bf16.msra.mxu0 %v295_v17 }
  0x29   :  { %205 = vmatpush.bf16.msra.mxu1 %v303_v18 }
  0x2b   :  { %193 = vmatmul.bf16.vlgmr.msra.gmra.mxu0 %v85_v19 }
  0x2c   :  { %206 = vmatmul.bf16.vlgmr.msra.gmra.mxu1 %v86_v20 }
  0xa8   :  { %v194_v22 = vpop.f32.mrf.mxu0 }
  0xa9   :  { %v207_v23 = vpop.f32.mrf.mxu1  ;;  %v195_v24 = vadd.f32 %v316_v21, %v194_v22 }
  0xab   :  { %v208_v25 = vadd.f32 %v207_v23, %v195_v24 }
  0xad   :  { %v211_v26 = vpack.c.bf16 %v208_v25, %v208_v25 }
  0xaf   :  { %212 = vst [vmem:[#allocation7] sm:$0xf] %v211_v26 }
  0xb0   :  { %v196_v27 = vpop.f32.mrf.mxu0  ;;  %223 = dma.vmem_to_hbm [thread:$0]  %s219_s25, 64, %s221_s28, [#allocation4]  }
  0xb1   :  { %v209_v28 = vpop.f32.mrf.mxu1 }
  0xb2   :  { %393 = dma.done.wait [#allocation4], 64  }
  0xb3   :  { %394 = vsyncadd [#allocation4], 4294967232 }
  0xb4   :  { %228 = vsyncpa [#allocation3], 1 }
  0xb5   :  { %229 = vsyncpa [#allocation6], 1 }
  0xb6   :  { %230 = vsyncpa [#allocation4], 1 }

</bundles_post_ra>
